<compile_context>
chip_gen: v6e
topology: v6e:2x2x1
jax: 0.10.0
libtpu: 0.0.40
codegen_flags: <defaults>
</compile_context>

<pallas_src>
import functools

import jax
import jax.numpy as jnp
from jax.experimental import pallas as pl
from jax.experimental.pallas import tpu as pltpu

_LANE = 128
_MAX_BLOCK_ELEMS = 256 * 1024   # per-input tile budget (f32) = 1 MiB


def _wdice_partial_kernel(p_ref, t_ref, inter_ref, union_ref, *, w0, w_delta):
    i = pl.program_id(0)

    @pl.when(i == 0)
    def _():
        inter_ref[...] = jnp.zeros_like(inter_ref)
        union_ref[...] = jnp.zeros_like(union_ref)

    p = p_ref[...].astype(jnp.float32)
    t = t_ref[...].astype(jnp.float32)
    w = t * jnp.float32(w_delta) + jnp.float32(w0)
    wp = w * p
    wt = w * t
    inter_ref[...] += wp * wt
    union_ref[...] += wp * wp + wt * wt


def weighted_dice_loss(logit, truth, weights=(0.5, 0.5), smooth=1e-05):
    """Equivalent of WeightedDiceLoss(weights, n_labels=1).forward(logit, truth)."""
    assert logit.shape == truth.shape
    batch = logit.shape[0]
    p2 = logit.reshape(batch, -1)   # keep input dtype on the HBM stream
    t2 = truth.reshape(batch, -1)
    n = p2.shape[1]

    # Tile size: as large as the VMEM budget allows, lane-dense (multiple of 128).
    cap = max(_LANE, ((_MAX_BLOCK_ELEMS // max(batch, 1)) // _LANE) * _LANE)
    n_pad128 = pl.cdiv(n, _LANE) * _LANE
    n_tile = min(n_pad128, cap)
    n_padded = pl.cdiv(n, n_tile) * n_tile
    if n_padded != n:
        # Zero padding contributes exactly 0 to both sums (w*p = w*t = 0).
        p2 = jnp.pad(p2, ((0, 0), (0, n_padded - n)))
        t2 = jnp.pad(t2, ((0, 0), (0, n_padded - n)))

    grid = (n_padded // n_tile,)
    tile_spec = pl.BlockSpec((batch, n_tile), lambda i: (0, i))
    acc_spec = pl.BlockSpec((batch, n_tile), lambda i: (0, 0))   # resident accumulator

    kernel = functools.partial(
        _wdice_partial_kernel,
        w0=float(weights[0]),
        w_delta=float(weights[1]) - float(weights[0]),
    )

    inter_part, union_part = pl.pallas_call(
        kernel,
        out_shape=(
            jax.ShapeDtypeStruct((batch, n_tile), jnp.float32),
            jax.ShapeDtypeStruct((batch, n_tile), jnp.float32),
        ),
        grid=grid,
        in_specs=[tile_spec, tile_spec],
        out_specs=(acc_spec, acc_spec),
        compiler_params=pltpu.CompilerParams(
            dimension_semantics=("arbitrary",)),
    )(p2, t2)

    intersection = jnp.sum(inter_part, axis=-1)          # (B,)
    union = jnp.sum(union_part, axis=-1)                 # (B,)
    dice = 1.0 - (2.0 * intersection + smooth) / (union + smooth)
    return jnp.mean(dice)


def _reference(logit, truth, weights=(0.5, 0.5), smooth=1e-05):
    batch = logit.shape[0]
    p = logit.reshape(batch, -1).astype(jnp.float32)
    t = truth.reshape(batch, -1).astype(jnp.float32)
    w = t * (weights[1] - weights[0]) + weights[0]
    p = w * p
    t = w * t
    inter = jnp.sum(p * t, axis=-1)
    union = jnp.sum(p * p, axis=-1) + jnp.sum(t * t, axis=-1)
    dice = 1.0 - (2.0 * inter + smooth) / (union + smooth)
    return jnp.mean(dice)


if __name__ == "__main__":
    key = jax.random.PRNGKey(0)
    k1, k2 = jax.random.split(key)
    # NCHW inputs, small shapes: logits + binary ground-truth mask.
    logit = jax.random.normal(k1, (2, 4, 16, 16), dtype=jnp.float32)
    truth = (jax.random.uniform(k2, (2, 4, 16, 16)) > 0.5).astype(jnp.float32)

    loss = weighted_dice_loss(logit, truth)
    loss = jax.block_until_ready(loss)

    ref = jax.block_until_ready(_reference(logit, truth))
    assert jnp.allclose(loss, ref, rtol=1e-5, atol=1e-5), (loss, ref)

    print("KERNEL_OK")
</pallas_src>

<mosaic_0001>
module attributes {stable_mosaic.version = 11 : i64} {
  func.func @_wdice_partial_kernel(%arg0: i32, %arg1: memref<2x1024xf32, #tpu.memory_space<vmem>>, %arg2: memref<2x1024xf32, #tpu.memory_space<vmem>>, %arg3: memref<2x1024xf32, #tpu.memory_space<vmem>>, %arg4: memref<2x1024xf32, #tpu.memory_space<vmem>>) attributes {dimension_semantics = [#tpu.dimension_semantics<arbitrary>], iteration_bounds = array<i64: 1>, scalar_prefetch = 0 : i64, scratch_operands = 0 : i64, tpu.core_type = #tpu.core_type<tc>, window_params = [{transform_indices = @transform_0, window_bounds = array<i64: 2, 1024>}, {transform_indices = @transform_1, window_bounds = array<i64: 2, 1024>}, {pipeline_mode = #tpu.pipeline_mode<synchronous>, transform_indices = @transform_2, window_bounds = array<i64: 2, 1024>}, {pipeline_mode = #tpu.pipeline_mode<synchronous>, transform_indices = @transform_3, window_bounds = array<i64: 2, 1024>}]} {
    %c0_i32 = arith.constant 0 : i32
    %0 = arith.cmpi eq, %arg0, %c0_i32 : i32
    %1 = arith.extui %0 : i1 to i32
    %c0_i32_0 = arith.constant 0 : i32
    %2 = arith.cmpi ne, %1, %c0_i32_0 : i32
    scf.if %2 {
      %cst_13 = arith.constant 0.000000e+00 : f32
      %21 = vector.broadcast %cst_13 : f32 to vector<2x1024xf32>
      %c0_14 = arith.constant 0 : index
      %c0_15 = arith.constant 0 : index
      %22 = vector.load %arg3[%c0_14, %c0_15] : memref<2x1024xf32, #tpu.memory_space<vmem>>, vector<2x1024xf32>
      tpu.vector_store %arg3[%c0_14, %c0_15], %21 {strides = array<i32>} : memref<2x1024xf32, #tpu.memory_space<vmem>>, vector<2x1024xf32>,
      %cst_16 = arith.constant 0.000000e+00 : f32
      %23 = vector.broadcast %cst_16 : f32 to vector<2x1024xf32>
      %c0_17 = arith.constant 0 : index
      %c0_18 = arith.constant 0 : index
      %24 = vector.load %arg4[%c0_17, %c0_18] : memref<2x1024xf32, #tpu.memory_space<vmem>>, vector<2x1024xf32>
      tpu.vector_store %arg4[%c0_17, %c0_18], %23 {strides = array<i32>} : memref<2x1024xf32, #tpu.memory_space<vmem>>, vector<2x1024xf32>,
    } else {
    }
    %c0 = arith.constant 0 : index
    %c0_1 = arith.constant 0 : index
    %3 = vector.load %arg1[%c0, %c0_1] : memref<2x1024xf32, #tpu.memory_space<vmem>>, vector<2x1024xf32>
    %c0_2 = arith.constant 0 : index
    %c0_3 = arith.constant 0 : index
    %4 = vector.load %arg2[%c0_2, %c0_3] : memref<2x1024xf32, #tpu.memory_space<vmem>>, vector<2x1024xf32>
    %cst = arith.constant 0.000000e+00 : f32
    %5 = vector.broadcast %cst : f32 to vector<2x1024xf32>
    %6 = arith.mulf %4, %5 : vector<2x1024xf32>
    %cst_4 = arith.constant 5.000000e-01 : f32
    %7 = vector.broadcast %cst_4 : f32 to vector<2x1024xf32>
    %8 = arith.addf %6, %7 : vector<2x1024xf32>
    %9 = arith.mulf %8, %3 : vector<2x1024xf32>
    %10 = arith.mulf %8, %4 : vector<2x1024xf32>
    %c0_5 = arith.constant 0 : index
    %c0_6 = arith.constant 0 : index
    %11 = vector.load %arg3[%c0_5, %c0_6] : memref<2x1024xf32, #tpu.memory_space<vmem>>, vector<2x1024xf32>
    %12 = arith.mulf %9, %10 : vector<2x1024xf32>
    %13 = arith.addf %11, %12 : vector<2x1024xf32>
    %c0_7 = arith.constant 0 : index
    %c0_8 = arith.constant 0 : index
    %14 = vector.load %arg3[%c0_7, %c0_8] : memref<2x1024xf32, #tpu.memory_space<vmem>>, vector<2x1024xf32>
    tpu.vector_store %arg3[%c0_7, %c0_8], %13 {strides = array<i32>} : memref<2x1024xf32, #tpu.memory_space<vmem>>, vector<2x1024xf32>,
    %c0_9 = arith.constant 0 : index
    %c0_10 = arith.constant 0 : index
    %15 = vector.load %arg4[%c0_9, %c0_10] : memref<2x1024xf32, #tpu.memory_space<vmem>>, vector<2x1024xf32>
    %16 = arith.mulf %9, %9 : vector<2x1024xf32>
    %17 = arith.mulf %10, %10 : vector<2x1024xf32>
    %18 = arith.addf %16, %17 : vector<2x1024xf32>
    %19 = arith.addf %15, %18 : vector<2x1024xf32>
    %c0_11 = arith.constant 0 : index
    %c0_12 = arith.constant 0 : index
    %20 = vector.load %arg4[%c0_11, %c0_12] : memref<2x1024xf32, #tpu.memory_space<vmem>>, vector<2x1024xf32>
    tpu.vector_store %arg4[%c0_11, %c0_12], %19 {strides = array<i32>} : memref<2x1024xf32, #tpu.memory_space<vmem>>, vector<2x1024xf32>,
    return
  }
  func.func @transform_0(%arg0: i32) -> (i32, i32) {
    %c0_i32 = arith.constant 0 : i32
    %c0_i32_0 = arith.constant 0 : i32
    return %c0_i32, %arg0 : i32, i32
  }
  func.func @transform_1(%arg0: i32) -> (i32, i32) {
    %c0_i32 = arith.constant 0 : i32
    %c0_i32_0 = arith.constant 0 : i32
    return %c0_i32, %arg0 : i32, i32
  }
  func.func @transform_2(%arg0: i32) -> (i32, i32) {
    %c0_i32 = arith.constant 0 : i32
    %c0_i32_0 = arith.constant 0 : i32
    %c0_i32_1 = arith.constant 0 : i32
    return %c0_i32, %c0_i32_0 : i32, i32
  }
  func.func @transform_3(%arg0: i32) -> (i32, i32) {
    %c0_i32 = arith.constant 0 : i32
    %c0_i32_0 = arith.constant 0 : i32
    %c0_i32_1 = arith.constant 0 : i32
    return %c0_i32, %c0_i32_0 : i32, i32
  }
}

</mosaic_0001>

<bundles_post_ra>
// kernel: tpu_custom_call.1
= control target key start
LH: loop header
LB: loop body
LE: loop exit
PB: predicated region body
PF: predicated region fallthrough
CT: control target
= control target key end

     0   :  { %9 = vsyncpa [#allocation3], 0  ;;  %s238_s0 = inlined_call_operand.hbm [shape: f32[2,1024], index: 0, kind: input, shape index: {}]   ;;  %s239_s1 = inlined_call_operand.hbm [shape: f32[2,1024], index: 1, kind: input, shape index: {}]   ;;  %s240_s2 = inlined_call_operand.hbm [shape: f32[2,1024], index: 2, kind: output, shape index: {0}]   ;;  %s241_s3 = inlined_call_operand.hbm [shape: f32[2,1024], index: 3, kind: output, shape index: {1}]  }
   0x1   :  { %10 = vsyncpa [#allocation6], 0 }
   0x2   :  { %11 = vsyncpa [#allocation4], 0 }
   0x3   :  { %12 = vsyncpa [#allocation9], 0  ;;  %s202_s12 = smov [#allocation2]   ;;  %s203_s14 = smov [#allocation5]  }
   0x4   :  { %s19_s13 = sshll.u32 %s202_s12, 4  ;;  %s29_s15 = sshll.u32 %s203_s14, 4  ;;  %s20_s13 = int_to_ptr.vmem [resolvable:$true] %s19_s13  ;;  %s30_s15 = int_to_ptr.vmem [resolvable:$true] %s29_s15 }
   0x5   :  { %s122_s16 = scalar_lea.vmem %s20_s13, 256  ;;  %p127_p1 = scmp.lt.s32.totalorder %s20_s13, %s20_s13 }
   0x6   :  { %p123_p0 = scmp.ne.s32.totalorder %s20_s13, %s122_s16  ;;  %p128_p2 = scmp.lt.s32.totalorder %s122_s16, %s122_s16 }
   0x8   :  { %p129_p3 = por %p128_p2, %p127_p1 }
   0xa   :  { %p130_p4 = pnand %p129_p3, %p123_p0 }
   0xc   :  { %133 = shalt.err (!%p130_p4)
}
   0xd   :  { %22 = dma.hbm_to_vmem [thread:$0]  %s238_s0, 256, %s20_s13, [#allocation3]  }
   0xe   :  { %s142_s19 = scalar_lea.vmem %s30_s15, 256  ;;  %p147_p6 = scmp.lt.s32.totalorder %s30_s15, %s30_s15 }
   0xf   :  { %p143_p5 = scmp.ne.s32.totalorder %s30_s15, %s142_s19  ;;  %p148_p7 = scmp.lt.s32.totalorder %s142_s19, %s142_s19 }
  0x11   :  { %p149_p8 = por %p148_p7, %p147_p6 }
  0x13   :  { %p150_p9 = pnand %p149_p8, %p143_p5 }
  0x15   :  { %153 = shalt.err (!%p150_p9)
}
  0x16   :  { %32 = dma.hbm_to_vmem [thread:$0]  %s239_s1, 256, %s30_s15, [#allocation6]  }
  0x17   :  { %194 = dma.done.wait [#allocation3], 256  }
  0x18   :  { %195 = vsyncadd [#allocation3], 4294967040 }
  0x19   :  { %196 = dma.done.wait [#allocation6], 256  }
  0x1a   :  { %197 = vsyncadd [#allocation6], 4294967040  ;;  %v49_v0 = vld [vmem:[#allocation5] sm:$0xff]  ;;  %v50_v2 = vld [vmem:[#allocation5 + $0x8] sm:$0xff]  ;;  %s204_s0 = smov [#allocation7]   ;;  %s205_s22 = smov [#allocation8]  }
  0x1b   :  { %v51_v1 = vmul.f32 0.0, %v49_v0  ;;  %v47_v3 = vld [vmem:[#allocation2] sm:$0xff]  ;;  %v52_v4 = vmul.f32 0.0, %v50_v2  ;;  %v48_v6 = vld [vmem:[#allocation2 + $0x8] sm:$0xff]  ;;  %s85_s1 = sshll.u32 %s204_s0, 4  ;;  %s95_s23 = sshll.u32 %s205_s22, 4  ;;  %s86_s1 = int_to_ptr.vmem [resolvable:$true] %s85_s1  ;;  %s96_s23 = int_to_ptr.vmem [resolvable:$true] %s95_s23 }
  0x1c   :  { %s154_s24 = scalar_lea.vmem %s86_s1, 256  ;;  %p159_p11 = scmp.lt.s32.totalorder %s86_s1, %s86_s1 }
  0x1d   :  { %v53_v5 = vadd.f32 0.5, %v51_v1  ;;  %v54_v7 = vadd.f32 0.5, %v52_v4  ;;  %p155_p10 = scmp.ne.s32.totalorder %s86_s1, %s154_s24  ;;  %p160_p12 = scmp.lt.s32.totalorder %s154_s24, %s154_s24 }
  0x1f   :  { %v55_v8 = vmul.f32 %v53_v5, %v47_v3  ;;  %v57_v9 = vmul.f32 %v53_v5, %v49_v0  ;;  %v56_v10 = vmul.f32 %v54_v7, %v48_v6  ;;  %v58_v11 = vmul.f32 %v54_v7, %v50_v2  ;;  %p161_p13 = por %p160_p12, %p159_p11 }
  0x21   :  { %v61_v12 = vmul.f32 %v57_v9, %v55_v8  ;;  %v69_v13 = vmul.f32 %v55_v8, %v55_v8  ;;  %v71_v14 = vmul.f32 %v57_v9, %v57_v9  ;;  %v62_v15 = vmul.f32 %v58_v11, %v56_v10  ;;  %p162_p0 = pnand %p161_p13, %p155_p10 }
  0x22   :  { %v70_v16 = vmul.f32 %v56_v10, %v56_v10  ;;  %v72_v17 = vmul.f32 %v58_v11, %v58_v11 }
  0x23   :  { %v73_v18 = vadd.f32 %v71_v14, %v69_v13  ;;  %65 = vst [vmem:[#allocation7] sm:$0xff] %v61_v12  ;;  %66 = vst [vmem:[#allocation7 + $0x8] sm:$0xff] %v62_v15 }
  0x24   :  { %v74_v19 = vadd.f32 %v72_v17, %v70_v16 }
  0x25   :  { %77 = vst [vmem:[#allocation8] sm:$0xff] %v73_v18 }
  0x26   :  { %165 = shalt.err (!%p162_p0)
}
  0x27   :  { %88 = dma.vmem_to_hbm [thread:$0]  %s86_s1, 256, %s240_s2, [#allocation4]   ;;  %78 = vst [vmem:[#allocation8 + $0x8] sm:$0xff] %v74_v19 }
  0x28   :  { %s174_s27 = scalar_lea.vmem %s96_s23, 256  ;;  %p179_p2 = scmp.lt.s32.totalorder %s96_s23, %s96_s23 }
  0x29   :  { %p175_p1 = scmp.ne.s32.totalorder %s96_s23, %s174_s27  ;;  %p180_p3 = scmp.lt.s32.totalorder %s174_s27, %s174_s27 }
  0x2b   :  { %p181_p4 = por %p180_p3, %p179_p2 }
  0x2d   :  { %p182_p5 = pnand %p181_p4, %p175_p1 }
  0x2f   :  { %185 = shalt.err (!%p182_p5)
}
  0x30   :  { %98 = dma.vmem_to_hbm [thread:$0]  %s96_s23, 256, %s241_s3, [#allocation9]  }
  0x31   :  { %198 = dma.done.wait [#allocation4], 256  }
  0x32   :  { %199 = vsyncadd [#allocation4], 4294967040 }
  0x33   :  { %200 = dma.done.wait [#allocation9], 256  }
  0x34   :  { %201 = vsyncadd [#allocation9], 4294967040 }
  0x35   :  { %105 = vsyncpa [#allocation3], 1 }
  0x36   :  { %106 = vsyncpa [#allocation6], 1 }
  0x37   :  { %107 = vsyncpa [#allocation4], 1 }
  0x38   :  { %108 = vsyncpa [#allocation9], 1 }

</bundles_post_ra>
